<compile_context>
chip_gen: v7x
topology: tpu7x:2x2x1
jax: 0.10.0
libtpu: 0.0.40
codegen_flags: <defaults>
</compile_context>

<pallas_src>
import functools

import jax
import jax.numpy as jnp
from jax.experimental import pallas as pl
from jax.experimental.pallas import tpu as pltpu

EPS = 1e-7          # sccross EPS added to std
BN_EPS = 1e-5       # torch.nn.BatchNorm1d default eps
LEAKY_SLOPE = 0.2


# --------------------------------------------------------------------------- #
# Kernel
# --------------------------------------------------------------------------- #
def _encoder_kernel(*refs, use_alt: bool, out_features: int):
    if use_alt:
        (x_ref, alt_ref, w0_ref, w1_ref, b01_ref, wh_ref, bh_ref,
         out_ref, l_ref) = refs
    else:
        (x_ref, w0_ref, w1_ref, b01_ref, wh_ref, bh_ref,
         out_ref, l_ref) = refs

    x = x_ref[...]

    # ----- compute_l: row-wise sum normalizer -----
    l = jnp.sum(x, axis=1, keepdims=True)                 # (TM, 1)
    l_ref[...] = l

    # ----- pick encoder input -----
    if use_alt:
        ptr = alt_ref[...]                                # xalt path
    else:
        # normalize(x, l) = x / l  via EUP reciprocal + one vmul (frees VALU)
        ptr = x * pl.reciprocal(l, approx=False)

    b01 = b01_ref[...]                                    # (2, h_dim) packed biases
    b0 = b01[0:1, :]
    b1 = b01[1:2, :]

    # layer 0: Linear -> LeakyReLU          (BN0 pre-folded into w1/b1)
    h = jnp.dot(ptr, w0_ref[...], preferred_element_type=jnp.float32) + b0
    h = jnp.maximum(h, LEAKY_SLOPE * h)                   # LeakyReLU(0.2)

    # layer 1: Linear(+BN0) -> LeakyReLU    (BN1 pre-folded into head weights)
    h = jnp.dot(h, w1_ref[...], preferred_element_type=jnp.float32) + b1
    h = jnp.maximum(h, LEAKY_SLOPE * h)

    # fused output heads: [loc | std_lin] in a single MXU push, one lane-dense store
    out = jnp.dot(h, wh_ref[...], preferred_element_type=jnp.float32) + bh_ref[...]
    col = jax.lax.broadcasted_iota(jnp.int32, out.shape, 1)
    out_ref[...] = jnp.where(col < out_features, out, jax.nn.softplus(out) + EPS)


# --------------------------------------------------------------------------- #
# Parameter folding (BatchNorm -> next Linear, heads fused, biases packed)
# --------------------------------------------------------------------------- #
def fold_params(p):
    """Fold eval-mode BN into the following Linear and fuse the two heads."""
    def bn_affine(g, be, rm, rv):
        s = g * jax.lax.rsqrt(rv + BN_EPS)        # per-channel scale   (1, dim)
        t = be - rm * s                           # per-channel shift   (1, dim)
        return s, t

    s0, t0 = bn_affine(p["g0"], p["be0"], p["rm0"], p["rv0"])
    s1, t1 = bn_affine(p["g1"], p["be1"], p["rm1"], p["rv1"])

    # BN0 commutes into layer-1 linear:  (h*s0 + t0) @ w1 + b1
    w1f = p["w1"] * s0.reshape(-1, 1)
    b1f = p["b1"] + t0 @ p["w1"]

    # fuse loc / std_lin heads, then fold BN1 into them
    wh = jnp.concatenate([p["wl"], p["ws"]], axis=1)      # (h_dim, 2*out)
    bh = jnp.concatenate([p["bl"], p["bs"]], axis=1)      # (1, 2*out)
    whf = wh * s1.reshape(-1, 1)
    bhf = bh + t1 @ wh

    b01 = jnp.concatenate([p["b0"], b1f], axis=0)         # (2, h_dim)

    return dict(w0=p["w0"], w1=w1f, b01=b01, wh=whf, bh=bhf)


# --------------------------------------------------------------------------- #
# Wrapper
# --------------------------------------------------------------------------- #
def _pick_tm(n):
    """Largest batch tile <= 512 that divides N (and keeps the (8,128) rule)."""
    for tm in (512, 256, 128, 64, 32, 16, 8):
        if tm <= n and n % tm == 0:
            return tm
    return n  # small / irregular batch: one full block


def data_encoder_forward(folded, x, xalt=None):
    """Returns (loc, std, l) — the Normal(loc, std) parameters and normalizer."""
    n, in_f = x.shape
    two_out = folded["wh"].shape[1]
    out_features = two_out // 2
    use_alt = (xalt is not None) and (xalt.size > 0)

    tm = _pick_tm(n)
    grid = (pl.cdiv(n, tm),)

    kernel = functools.partial(
        _encoder_kernel, use_alt=use_alt, out_features=out_features)

    def full_spec(arr):
        # weights stay VMEM-resident: same block for every grid step
        return pl.BlockSpec(arr.shape, lambda i: (0,) * arr.ndim)

    in_specs = [pl.BlockSpec((tm, in_f), lambda i: (i, 0))]
    inputs = [x]
    if use_alt:
        in_specs.append(pl.BlockSpec((tm, xalt.shape[1]), lambda i: (i, 0)))
        inputs.append(xalt)
    for name in ("w0", "w1", "b01", "wh", "bh"):
        arr = folded[name]
        in_specs.append(full_spec(arr))
        inputs.append(arr)

    out_shape = (
        jax.ShapeDtypeStruct((n, two_out), jnp.float32),   # [loc | std] slab
        jax.ShapeDtypeStruct((n, 1), jnp.float32),         # l
    )
    out_specs = (
        pl.BlockSpec((tm, two_out), lambda i: (i, 0)),
        pl.BlockSpec((tm, 1), lambda i: (i, 0)),
    )

    slab, l = pl.pallas_call(
        kernel,
        grid=grid,
        in_specs=in_specs,
        out_specs=out_specs,
        out_shape=out_shape,
        compiler_params=pltpu.CompilerParams(
            dimension_semantics=("parallel",)),             # shards batch over TCs (v7x)
    )(*inputs)

    return slab[:, :out_features], slab[:, out_features:], l


# --------------------------------------------------------------------------- #
# Deterministic init + pure-JAX reference (uses the *unfolded* params)
# --------------------------------------------------------------------------- #
def _init_params(key, in_features, out_features, h_dim):
    ks = jax.random.split(key, 8)

    def linear(k, fan_in, fan_out):
        kw, kb = jax.random.split(k)
        bound = 1.0 / jnp.sqrt(fan_in)
        w = jax.random.uniform(kw, (fan_in, fan_out), jnp.float32, -bound, bound)
        b = jax.random.uniform(kb, (1, fan_out), jnp.float32, -bound, bound)
        return w, b

    w0, b0 = linear(ks[0], in_features, h_dim)
    w1, b1 = linear(ks[1], h_dim, h_dim)
    wl, bl = linear(ks[2], h_dim, out_features)
    ws, bs = linear(ks[3], h_dim, out_features)

    def bn(k, dim):
        kg, km, kv = jax.random.split(k, 3)
        g = 1.0 + 0.01 * jax.random.normal(kg, (1, dim), jnp.float32)
        be = jnp.zeros((1, dim), jnp.float32)
        rm = 0.01 * jax.random.normal(km, (1, dim), jnp.float32)
        rv = 1.0 + 0.01 * jax.random.uniform(kv, (1, dim), jnp.float32)
        return g, be, rm, rv

    g0, be0, rm0, rv0 = bn(ks[4], h_dim)
    g1, be1, rm1, rv1 = bn(ks[5], h_dim)

    return dict(w0=w0, b0=b0, g0=g0, be0=be0, rm0=rm0, rv0=rv0,
                w1=w1, b1=b1, g1=g1, be1=be1, rm1=rm1, rv1=rv1,
                wl=wl, bl=bl, ws=ws, bs=bs)


def _reference_forward(params, x, xalt=None):
    l = jnp.sum(x, axis=1, keepdims=True)
    use_alt = (xalt is not None) and (xalt.size > 0)
    ptr = xalt if use_alt else x / l
    for i in ("0", "1"):
        ptr = ptr @ params[f"w{i}"] + params[f"b{i}"]
        ptr = jnp.where(ptr > 0, ptr, LEAKY_SLOPE * ptr)
        ptr = (ptr - params[f"rm{i}"]) / jnp.sqrt(params[f"rv{i}"] + BN_EPS)
        ptr = ptr * params[f"g{i}"] + params[f"be{i}"]
    loc = ptr @ params["wl"] + params["bl"]
    std = jax.nn.softplus(ptr @ params["ws"] + params["bs"]) + EPS
    return loc, std, l


if __name__ == "__main__":
    # Small shapes consistent with the module: batch=16, in_features=16,
    # out_features=8, h_depth=2, h_dim=32.
    N, IN_F, OUT_F, H_DIM = 16, 16, 8, 32

    key = jax.random.PRNGKey(0)
    k_params, k_x, k_xalt = jax.random.split(key, 3)

    raw_params = _init_params(k_params, IN_F, OUT_F, H_DIM)
    folded = fold_params(raw_params)           # one-time param prep (BN folded, heads fused)

    # Strictly positive "count-like" data so l > 0.
    x = jax.random.uniform(k_x, (N, IN_F), jnp.float32, 0.1, 5.0)
    xalt = jax.random.normal(k_xalt, (N, IN_F), jnp.float32)

    # Path 1: xalt empty -> encoder consumes normalize(x, l)
    loc1, std1, l1 = data_encoder_forward(folded, x, xalt=None)
    # Path 2: xalt non-empty -> encoder consumes xalt, l still from x
    loc2, std2, l2 = data_encoder_forward(folded, x, xalt=xalt)
    jax.block_until_ready((loc1, std1, l1, loc2, std2, l2))

    # Verify against pure-JAX reference (original, unfolded BN math).
    rloc1, rstd1, rl1 = _reference_forward(raw_params, x, xalt=None)
    rloc2, rstd2, rl2 = _reference_forward(raw_params, x, xalt=xalt)
    assert jnp.allclose(loc1, rloc1, atol=1e-4, rtol=1e-4)
    assert jnp.allclose(std1, rstd1, atol=1e-4, rtol=1e-4)
    assert jnp.allclose(l1, rl1, atol=1e-4, rtol=1e-4)
    assert jnp.allclose(loc2, rloc2, atol=1e-4, rtol=1e-4)
    assert jnp.allclose(std2, rstd2, atol=1e-4, rtol=1e-4)
    assert jnp.allclose(l2, rl2, atol=1e-4, rtol=1e-4)

    print("KERNEL_OK")
</pallas_src>

<mosaic_0001>
module attributes {stable_mosaic.version = 11 : i64} {
  func.func @_encoder_kernel(%arg0: i32, %arg1: memref<16x16xf32, #tpu.memory_space<vmem>>, %arg2: memref<16x32xf32, #tpu.memory_space<vmem>>, %arg3: memref<32x32xf32, #tpu.memory_space<vmem>>, %arg4: memref<2x32xf32, #tpu.memory_space<vmem>>, %arg5: memref<32x16xf32, #tpu.memory_space<vmem>>, %arg6: memref<1x16xf32, #tpu.memory_space<vmem>>, %arg7: memref<16x16xf32, #tpu.memory_space<vmem>>, %arg8: memref<16x1xf32, #tpu.memory_space<vmem>>) attributes {dimension_semantics = [#tpu.dimension_semantics<parallel>], iteration_bounds = array<i64: 1>, scalar_prefetch = 0 : i64, scratch_operands = 0 : i64, tpu.core_type = #tpu.core_type<tc>, window_params = [{transform_indices = @transform_0, window_bounds = array<i64: 16, 16>}, {pipeline_mode = #tpu.pipeline_mode<synchronous>, transform_indices = @transform_1, window_bounds = array<i64: 16, 32>}, {pipeline_mode = #tpu.pipeline_mode<synchronous>, transform_indices = @transform_2, window_bounds = array<i64: 32, 32>}, {pipeline_mode = #tpu.pipeline_mode<synchronous>, transform_indices = @transform_3, window_bounds = array<i64: 2, 32>}, {pipeline_mode = #tpu.pipeline_mode<synchronous>, transform_indices = @transform_4, window_bounds = array<i64: 32, 16>}, {pipeline_mode = #tpu.pipeline_mode<synchronous>, transform_indices = @transform_5, window_bounds = array<i64: 1, 16>}, {transform_indices = @transform_6, window_bounds = array<i64: 16, 16>}, {transform_indices = @transform_7, window_bounds = array<i64: 16, 1>}]} {
    %c0 = arith.constant 0 : index
    %c0_0 = arith.constant 0 : index
    %0 = vector.load %arg1[%c0, %c0_0] : memref<16x16xf32, #tpu.memory_space<vmem>>, vector<16x16xf32>
    %cst = arith.constant dense<0.000000e+00> : vector<16xf32>
    %1 = vector.multi_reduction <add>, %0, %cst [1] : vector<16x16xf32> to vector<16xf32>
    %2 = vector.shape_cast %1 : vector<16xf32> to vector<16x1xf32>
    %c0_1 = arith.constant 0 : index
    %c0_2 = arith.constant 0 : index
    %3 = vector.load %arg8[%c0_1, %c0_2] : memref<16x1xf32, #tpu.memory_space<vmem>>, vector<16x1xf32>
    tpu.vector_store %arg8[%c0_1, %c0_2], %2 {strides = array<i32>} : memref<16x1xf32, #tpu.memory_space<vmem>>, vector<16x1xf32>,
    %4 = tpu.reciprocal %2 : vector<16x1xf32> -> vector<16x1xf32>
    %5 = vector.broadcast %4 : vector<16x1xf32> to vector<16x16xf32>
    %6 = arith.mulf %0, %5 : vector<16x16xf32>
    %c0_3 = arith.constant 0 : index
    %c0_4 = arith.constant 0 : index
    %7 = vector.load %arg4[%c0_3, %c0_4] : memref<2x32xf32, #tpu.memory_space<vmem>>, vector<2x32xf32>
    %8 = vector.extract_strided_slice %7 {offsets = [0, 0], sizes = [1, 32], strides = [1, 1]} : vector<2x32xf32> to vector<1x32xf32>
    %9 = vector.extract_strided_slice %7 {offsets = [1, 0], sizes = [1, 32], strides = [1, 1]} : vector<2x32xf32> to vector<1x32xf32>
    %c0_5 = arith.constant 0 : index
    %c0_6 = arith.constant 0 : index
    %10 = vector.load %arg2[%c0_5, %c0_6] : memref<16x32xf32, #tpu.memory_space<vmem>>, vector<16x32xf32>
    %cst_7 = arith.constant dense<0.000000e+00> : vector<16x32xf32>
    %11 = tpu.matmul %6, %10, %cst_7 {dimension_numbers = #tpu.dot_dimension_numbers<[1], [0], [0], [1], [0, 0, 1, 1], [], []>} : vector<16x16xf32>, vector<16x32xf32>, vector<16x32xf32> -> vector<16x32xf32>
    %12 = vector.broadcast %8 : vector<1x32xf32> to vector<16x32xf32>
    %13 = arith.addf %11, %12 : vector<16x32xf32>
    %cst_8 = arith.constant 2.000000e-01 : f32
    %14 = vector.broadcast %cst_8 : f32 to vector<16x32xf32>
    %15 = arith.mulf %14, %13 : vector<16x32xf32>
    %16 = arith.maximumf %13, %15 : vector<16x32xf32>
    %c0_9 = arith.constant 0 : index
    %c0_10 = arith.constant 0 : index
    %17 = vector.load %arg3[%c0_9, %c0_10] : memref<32x32xf32, #tpu.memory_space<vmem>>, vector<32x32xf32>
    %cst_11 = arith.constant dense<0.000000e+00> : vector<16x32xf32>
    %18 = tpu.matmul %16, %17, %cst_11 {dimension_numbers = #tpu.dot_dimension_numbers<[1], [0], [0], [1], [0, 0, 1, 1], [], []>} : vector<16x32xf32>, vector<32x32xf32>, vector<16x32xf32> -> vector<16x32xf32>
    %19 = vector.broadcast %9 : vector<1x32xf32> to vector<16x32xf32>
    %20 = arith.addf %18, %19 : vector<16x32xf32>
    %cst_12 = arith.constant 2.000000e-01 : f32
    %21 = vector.broadcast %cst_12 : f32 to vector<16x32xf32>
    %22 = arith.mulf %21, %20 : vector<16x32xf32>
    %23 = arith.maximumf %20, %22 : vector<16x32xf32>
    %c0_13 = arith.constant 0 : index
    %c0_14 = arith.constant 0 : index
    %24 = vector.load %arg5[%c0_13, %c0_14] : memref<32x16xf32, #tpu.memory_space<vmem>>, vector<32x16xf32>
    %cst_15 = arith.constant dense<0.000000e+00> : vector<16x16xf32>
    %25 = tpu.matmul %23, %24, %cst_15 {dimension_numbers = #tpu.dot_dimension_numbers<[1], [0], [0], [1], [0, 0, 1, 1], [], []>} : vector<16x32xf32>, vector<32x16xf32>, vector<16x16xf32> -> vector<16x16xf32>
    %c0_16 = arith.constant 0 : index
    %c0_17 = arith.constant 0 : index
    %26 = vector.load %arg6[%c0_16, %c0_17] : memref<1x16xf32, #tpu.memory_space<vmem>>, vector<1x16xf32>
    %27 = vector.broadcast %26 : vector<1x16xf32> to vector<16x16xf32>
    %28 = arith.addf %25, %27 : vector<16x16xf32>
    %29 = tpu.iota {dimensions = array<i32: 1>} : vector<16x16xi32>
    %c8_i32 = arith.constant 8 : i32
    %30 = vector.broadcast %c8_i32 : i32 to vector<16x16xi32>
    %31 = arith.cmpi slt, %29, %30 : vector<16x16xi32>
    %cst_18 = arith.constant 0.000000e+00 : f32
    %32 = vector.broadcast %cst_18 : f32 to vector<16x16xf32>
    %33 = arith.maximumf %28, %32 : vector<16x16xf32>
    %34 = vector.broadcast %cst_18 : f32 to vector<16x16xf32>
    %35 = arith.subf %28, %34 : vector<16x16xf32>
    %36 = arith.cmpf one, %35, %35 : vector<16x16xf32>
    %37 = vector.broadcast %cst_18 : f32 to vector<16x16xf32>
    %38 = arith.addf %28, %37 : vector<16x16xf32>
    %39 = math.absf %35 : vector<16x16xf32>
    %cst_19 = arith.constant 0.000000e+00 : f32
    %40 = vector.broadcast %cst_19 : f32 to vector<16x16xf32>
    %41 = arith.subf %40, %39 : vector<16x16xf32>
    %42 = math.exp %41 : vector<16x16xf32>
    %43 = math.log1p %42 : vector<16x16xf32>
    %44 = arith.addf %33, %43 : vector<16x16xf32>
    %45 = arith.select %36, %38, %44 : vector<16x16xi1>, vector<16x16xf32>
    %cst_20 = arith.constant 1.000000e-07 : f32
    %46 = vector.broadcast %cst_20 : f32 to vector<16x16xf32>
    %47 = arith.addf %45, %46 : vector<16x16xf32>
    %48 = arith.select %31, %28, %47 : vector<16x16xi1>, vector<16x16xf32>
    %c0_21 = arith.constant 0 : index
    %c0_22 = arith.constant 0 : index
    %49 = vector.load %arg7[%c0_21, %c0_22] : memref<16x16xf32, #tpu.memory_space<vmem>>, vector<16x16xf32>
    tpu.vector_store %arg7[%c0_21, %c0_22], %48 {strides = array<i32>} : memref<16x16xf32, #tpu.memory_space<vmem>>, vector<16x16xf32>,
    return
  }
  func.func @transform_0(%arg0: i32) -> (i32, i32) {
    %c0_i32 = arith.constant 0 : i32
    %c0_i32_0 = arith.constant 0 : i32
    return %arg0, %c0_i32 : i32, i32
  }
  func.func @transform_1(%arg0: i32) -> (i32, i32) {
    %c0_i32 = arith.constant 0 : i32
    %c0_i32_0 = arith.constant 0 : i32
    %c0_i32_1 = arith.constant 0 : i32
    return %c0_i32, %c0_i32_0 : i32, i32
  }
  func.func @transform_2(%arg0: i32) -> (i32, i32) {
    %c0_i32 = arith.constant 0 : i32
    %c0_i32_0 = arith.constant 0 : i32
    %c0_i32_1 = arith.constant 0 : i32
    return %c0_i32, %c0_i32_0 : i32, i32
  }
  func.func @transform_3(%arg0: i32) -> (i32, i32) {
    %c0_i32 = arith.constant 0 : i32
    %c0_i32_0 = arith.constant 0 : i32
    %c0_i32_1 = arith.constant 0 : i32
    return %c0_i32, %c0_i32_0 : i32, i32
  }
  func.func @transform_4(%arg0: i32) -> (i32, i32) {
    %c0_i32 = arith.constant 0 : i32
    %c0_i32_0 = arith.constant 0 : i32
    %c0_i32_1 = arith.constant 0 : i32
    return %c0_i32, %c0_i32_0 : i32, i32
  }
  func.func @transform_5(%arg0: i32) -> (i32, i32) {
    %c0_i32 = arith.constant 0 : i32
    %c0_i32_0 = arith.constant 0 : i32
    %c0_i32_1 = arith.constant 0 : i32
    return %c0_i32, %c0_i32_0 : i32, i32
  }
  func.func @transform_6(%arg0: i32) -> (i32, i32) {
    %c0_i32 = arith.constant 0 : i32
    %c0_i32_0 = arith.constant 0 : i32
    return %arg0, %c0_i32 : i32, i32
  }
  func.func @transform_7(%arg0: i32) -> (i32, i32) {
    %c0_i32 = arith.constant 0 : i32
    %c0_i32_0 = arith.constant 0 : i32
    return %arg0, %c0_i32 : i32, i32
  }
}

</mosaic_0001>

<bundles_post_ra>
// kernel: tpu_custom_call.1
= control target key start
LH: loop header
LB: loop body
LE: loop exit
PB: predicated region body
PF: predicated region fallthrough
CT: control target
= control target key end

     0   :  { %13 = vsyncpa [#allocation3], 0  ;;  %s664_s0 = inlined_call_operand.vmem [shape: f32[16,16], index: 0, kind: input, shape index: {}]   ;;  %s665_s1 = inlined_call_operand.hbm [shape: f32[16,32], index: 1, kind: input, shape index: {}]   ;;  %s666_s2 = inlined_call_operand.vmem [shape: f32[32,32], index: 2, kind: input, shape index: {}]   ;;  %s667_s3 = inlined_call_operand.vmem [shape: f32[2,32], index: 3, kind: input, shape index: {}]   ;;  %s668_s4 = inlined_call_operand.vmem [shape: f32[32,16], index: 4, kind: input, shape index: {}]   ;;  %s669_s5 = inlined_call_operand.vmem [shape: f32[1,16], index: 5, kind: input, shape index: {}]   ;;  %s670_s6 = inlined_call_operand.hbm [shape: f32[16,16], index: 6, kind: output, shape index: {0}]   ;;  %s671_s7 = inlined_call_operand.vmem [shape: f32[16,1], index: 7, kind: output, shape index: {1}]  }
   0x1   :  { %14 = vsyncpa [#allocation4], 0  ;;  %s536_s24 = smov [#allocation2]   ;;  %s488_s28 = scalar_lea.hbm %s665_s1, 256 }
   0x2   :  { %s22_s25 = sshll.u32 %s536_s24, 4  ;;  %p489_p0 = scmp.ne.s32.totalorder %s665_s1, %s488_s28  ;;  %s23_s25 = int_to_ptr.vmem [resolvable:$true] %s22_s25 }
   0x3   :  { %p492_p1 = scmp.lt.u32.totalorder %s488_s28, %s665_s1 }
   0x5   :  { %p494_p2 = pnand %p492_p1, %p489_p0 }
   0x7   :  { %497 = shalt.err (!%p494_p2)
}
   0x8   :  { %s498_s10 = scalar_lea.vmem %s23_s25, 256  ;;  %p503_p4 = scmp.lt.s32.totalorder %s23_s25, %s23_s25 }
   0x9   :  { %p499_p3 = scmp.ne.s32.totalorder %s23_s25, %s498_s10  ;;  %p504_p5 = scmp.lt.s32.totalorder %s498_s10, %s498_s10 }
   0xb   :  { %p505_p6 = por %p504_p5, %p503_p4 }
   0xd   :  { %p506_p7 = pnand %p505_p6, %p499_p3 }
   0xf   :  { %509 = shalt.err (!%p506_p7)
}
  0x10   :  { %s537_s11 = smov 128   ;;  %s538_s12 = smov 8  }
  0x11   :  { %28 = dma.hbm_to_vmem [thread:$0]  %s665_s1, 256, %s23_s25, [#allocation3], %s537_s11, %s537_s11, %s538_s12  }
  0x12   :  { %532 = dma.done.wait [#allocation3], 256  }
  0x13   :  { %533 = vsyncadd [#allocation3], 4294967040  ;;  %vm42_vm0 = vcmask 130048   ;;  %v40_v0 = vld [vmem:[%s664_s0] sm:$0xff]  ;;  %v41_v1 = vld [vmem:[%s664_s0 + $0x8] sm:$0xff]  ;;  %vm49_vm1 = vcmask 7168   ;;  %v59_v19 = vlaneseq }
  0x14   :  { %v43_v2 = vsel %vm42_vm0, %v40_v0, 0.0  ;;  %v46_v3 = vsel %vm42_vm0, %v41_v1, 0.0  ;;  %v57_v4 = vld [vmem:[#allocation2] sm:$0xff]  ;;  %v58_v5 = vld [vmem:[#allocation2 + $0x8] sm:$0xff]  ;;  %v150_v16 = vld [vmem:[%s666_s2 + $0x10] sm:$0xff]  ;;  %vm156_vm2 = vcmask 261120  }
  0x15   :  { %44 = vadd.xlane.f32.xlu0 %v43_v2  ;;  %v452_v6 = vpack.c.bf16 %v58_v5, %v57_v4  ;;  %v148_v13 = vld [vmem:[%s666_s2] sm:$0xff]  ;;  %v149_v14 = vld [vmem:[%s666_s2 + $0x8] sm:$0xff]  ;;  %v151_v17 = vld [vmem:[%s666_s2 + $0x18] sm:$0xff]  ;;  %v60_v20 = vshrl.u32 %v59_v19, 7 }
  0x16   :  { %v456_v15 = vpack.c.bf16 %v149_v14, %v148_v13  ;;  %v460_v18 = vpack.c.bf16 %v151_v17, %v150_v16  ;;  %v56_v22 = vld [vmem:[%s667_s3] sm:$0x3]  ;;  %v243_v33 = vld [vmem:[%s668_s4 + $0x8] sm:$0xff]  ;;  %v244_v35 = vld [vmem:[%s668_s4 + $0x10] sm:$0xff] }
  0x17   :  { %453 = vmatprep.subr.bf16.mxu0 %v452_v6  ;;  %v61_v21 = vsub.s32 0, %v60_v20  ;;  %v242_v32 = vld [vmem:[%s668_s4] sm:$0xff]  ;;  %v245_v36 = vld [vmem:[%s668_s4 + $0x18] sm:$0xff]  ;;  %v154_v38 = vsub.s32 1, %v60_v20  ;;  %s539_s4 = smov [#allocation5]  }
  0x18   :  { %455 = vmatpush3.bf16.msra.mxu0 %v452_v6  ;;  %457 = vmatprep.subr.bf16.mxu1 %v456_v15  ;;  %v464_v34 = vpack.c.bf16 %v243_v33, %v242_v32  ;;  %v468_v37 = vpack.c.bf16 %v245_v36, %v244_v35  ;;  %v404_v48 = vld [vmem:[%s669_s5] ss:$0 sm:$0xff]  ;;  %s384_s5 = sshll.u32 %s539_s4, 4  ;;  %s385_s5 = int_to_ptr.vmem [resolvable:$true] %s384_s5 }
  0x19   :  { %47 = vadd.xlane.f32.xlu0 %v46_v3  ;;  %459 = vmatpush3.bf16.msra.mxu1 %v456_v15  ;;  %v62_v23 = vrot.slane %v56_v22, %v61_v21  ;;  %v155_v39 = vrot.slane %v56_v22, %v154_v38  ;;  %s510_s17 = scalar_lea.vmem %s385_s5, 256  ;;  %p515_p9 = scmp.lt.s32.totalorder %s385_s5, %s385_s5 }
  0x1a   :  { %461 = vmatprep.subr.bf16.mxu1 %v460_v18  ;;  %465 = vmatprep.subr.bf16.mxu0 %v464_v34  ;;  %p511_p8 = scmp.ne.s32.totalorder %s385_s5, %s510_s17  ;;  %p516_p10 = scmp.lt.s32.totalorder %s510_s17, %s510_s17 }
  0x1c   :  { %p517_p11 = por %p516_p10, %p515_p9 }
  0x1d   :  { %463 = vmatpush3.bf16.msra.mxu1 %v460_v18 }
  0x1e   :  { %p518_p12 = pnand %p517_p11, %p511_p8 }
  0xa2   :  { %v45_v7 = vpop.xlane.xlu0 %44 }
  0xa3   :  { %50 = vst.msk [vmem:[%s671_s7] sm:$0xff] %vm49_vm1, %v45_v7  ;;  %476 = vrcp.f32 %v45_v7  ;;  %v335_v7 = vand.u32 127, %v59_v19 }
  0xa5   :  { %vm336_vm6 = vcmp.lt.s32.totalorder %v335_v7, 8 }
  0xa6   :  { %v48_v8 = vpop.xlane.xlu0 %47 }
  0xa7   :  { %51 = vst.msk [vmem:[%s671_s7 + $0x8] sm:$0xff] %vm49_vm1, %v48_v8  ;;  %478 = vrcp.f32 %v48_v8 }
  0xad   :  { %v477_v9 = vpop.eup %476 }
  0xae   :  { %v54_v10 = vmul.f32 %v477_v9, %v40_v0 }
  0xb0   :  { %427 = vmatprep.mubr.msk.f32.mxu0 %vm42_vm0, %v54_v10 }
  0xb1   :  { %v479_v11 = vpop.eup %478 }
  0xb2   :  { %v55_v12 = vmul.f32 %v479_v11, %v41_v1 }
  0xb4   :  { %428 = vmatmul.mubr.msk.f32.vlgmr.msra.gmra.mrb[0].mxu0 %vm42_vm0, %v55_v12 }
  0xb5   :  { %467 = vmatpush3.bf16.msra.mxu0 %v464_v34 }
  0xb6   :  { %469 = vmatprep.subr.bf16.mxu0 %v468_v37 }
  0xb9   :  { %471 = vmatpush3.bf16.msra.mxu0 %v468_v37 }
 0x187   :  { %v429_v24 = vpop.f32.mrb[0].mxu0 }
 0x188   :  { %v141_v25 = vadd.f32 %v429_v24, %v62_v23  ;;  %v135_v26 = vpop.f32.mrb[1].mxu0 }
 0x189   :  { %v136_v27 = vadd.f32 %v135_v26, %v62_v23 }
 0x18a   :  { %v145_v28 = vmul.f32 0.2, %v141_v25 }
 0x18b   :  { %v144_v29 = vmul.f32 0.2, %v136_v27 }
 0x18c   :  { %v147_v31 = vmax.f32 %v141_v25, %v145_v28 }
 0x18d   :  { %v146_v30 = vmax.f32 %v136_v27, %v144_v29 }
 0x18f   :  { %438 = vmatprep.mubr.msk.f32.mxu1 %vm156_vm2, %v146_v30 }
 0x190   :  { %439 = vmatmul.mubr.msk.f32.vlgmr.msra.gmra.mrb[0].mxu1 %vm156_vm2, %v147_v31 }
 0x263   :  { %v440_v40 = vpop.f32.mrb[0].mxu1 }
 0x264   :  { %v235_v41 = vadd.f32 %v440_v40, %v155_v39  ;;  %v229_v42 = vpop.f32.mrb[1].mxu1 }
 0x265   :  { %v230_v43 = vadd.f32 %v229_v42, %v155_v39 }
 0x266   :  { %v239_v44 = vmul.f32 0.2, %v235_v41 }
 0x267   :  { %v238_v45 = vmul.f32 0.2, %v230_v43 }
 0x268   :  { %v241_v47 = vmax.f32 %v235_v41, %v239_v44 }
 0x269   :  { %v240_v46 = vmax.f32 %v230_v43, %v238_v45 }
 0x26b   :  { %449 = vmatprep.mubr.msk.f32.mxu0 %vm156_vm2, %v240_v46 }
 0x26c   :  { %450 = vmatmul.mubr.msk.f32.vlgmr.msra.gmra.mrb[2].mxu0 %vm156_vm2, %v241_v47 }
 0x33f   :  { %v451_v49 = vpop.f32.mrb[2].mxu0 }
 0x340   :  { %v331_v50 = vadd.f32 %v451_v49, %v404_v48  ;;  %v325_v51 = vpop.f32.mrb[3].mxu0 }
 0x341   :  { %v326_v52 = vadd.f32 %v404_v48, %v325_v51 }
 0x342   :  { %v344_v53 = vand.u32 2147483647, %v331_v50  ;;  %v338_v10 = vmax.f32 %v331_v50, 0.0  ;;  %vm340_vm5 = vcmp.ne.f32.partialorder %v331_v50, %v331_v50 }
 0x343   :  { %v343_v54 = vand.u32 2147483647, %v326_v52  ;;  %v337_v13 = vmax.f32 %v326_v52, 0.0  ;;  %vm339_vm7 = vcmp.ne.f32.partialorder %v326_v52, %v326_v52 }
 0x344   :  { %v346_v55 = vsub.f32 0.0, %v344_v53 }
 0x345   :  { %v345_v56 = vsub.f32 0.0, %v343_v54 }
 0x346   :  { %v349_v57 = vmul.f32 1.442695, %v346_v55 }
 0x347   :  { %v347_v58 = vmul.f32 1.442695, %v345_v56 }
 0x348   :  { %480 = vpow2.f32 %v349_v57 }
 0x349   :  { %482 = vpow2.f32 %v347_v58 }
 0x352   :  { %v481_v59 = vpop.eup %480 }
 0x353   :  { %v483_v60 = vpop.eup %482  ;;  %v360_v61 = vadd.f32 1.0, %v481_v59  ;;  %v363_v63 = vmul.f32 -0.5, %v481_v59  ;;  %v366_v3 = vand.u32 2147483647, %v481_v59 }
 0x354   :  { %v351_v62 = vadd.f32 1.0, %v483_v60  ;;  %v354_v0 = vmul.f32 -0.5, %v483_v60  ;;  %v357_v4 = vand.u32 2147483647, %v483_v60 }
 0x355   :  { %484 = vlog2.f32 %v360_v61  ;;  %v364_v1 = vadd.f32 1.0, %v363_v63  ;;  %vm367_vm3 = vcmp.lt.f32.partialorder %v366_v3, 0.0004427343 }
 0x356   :  { %486 = vlog2.f32 %v351_v62  ;;  %v355_v2 = vadd.f32 1.0, %v354_v0  ;;  %vm358_vm4 = vcmp.lt.f32.partialorder %v357_v4, 0.0004427343 }
 0x357   :  { %v365_v9 = vmul.f32 %v481_v59, %v364_v1 }
 0x358   :  { %v356_v12 = vmul.f32 %v483_v60, %v355_v2 }
 0x35f   :  { %v485_v5 = vpop.eup %484 }
 0x360   :  { %v487_v6 = vpop.eup %486  ;;  %v362_v8 = vmul.f32 0.6931472, %v485_v5 }
 0x361   :  { %v353_v11 = vmul.f32 0.6931472, %v487_v6 }
 0x362   :  { %v368_v14 = vsel %vm367_vm3, %v365_v9, %v362_v8 }
 0x363   :  { %v359_v15 = vsel %vm358_vm4, %v356_v12, %v353_v11  ;;  %v370_v16 = vadd.f32 %v368_v14, %v338_v10 }
 0x364   :  { %v369_v17 = vadd.f32 %v359_v15, %v337_v13 }
 0x365   :  { %v372_v18 = vsel %vm340_vm5, %v331_v50, %v370_v16 }
 0x366   :  { %v371_v20 = vsel %vm339_vm7, %v326_v52, %v369_v17  ;;  %v374_v19 = vadd.f32 1e-07, %v372_v18 }
 0x367   :  { %v373_v21 = vadd.f32 1e-07, %v371_v20 }
 0x368   :  { %v376_v22 = vsel %vm336_vm6, %v331_v50, %v374_v19 }
 0x369   :  { %v375_v23 = vsel %vm336_vm6, %v326_v52, %v373_v21  ;;  %378 = vst.msk [vmem:[#allocation5 + $0x8] sm:$0xff] %vm42_vm0, %v376_v22 }
 0x36a   :  { %377 = vst.msk [vmem:[#allocation5] sm:$0xff] %vm42_vm0, %v375_v23 }
 0x36b   :  { %521 = shalt.err (!%p518_p12)
}
 0x36c   :  { %s522_s19 = scalar_lea.hbm %s670_s6, 256 }
 0x36d   :  { %p523_p13 = scmp.ne.s32.totalorder %s670_s6, %s522_s19  ;;  %p526_p0 = scmp.lt.u32.totalorder %s522_s19, %s670_s6 }
 0x36f   :  { %p528_p1 = pnand %p526_p0, %p523_p13 }
 0x371   :  { %531 = shalt.err (!%p528_p1)
}
 0x372   :  { %390 = dma.vmem_to_hbm [thread:$0]  %s385_s5, 256, %s670_s6, [#allocation4], %s537_s11, %s537_s11, %s538_s12  }
 0x373   :  { %534 = dma.done.wait [#allocation4], 256  }
 0x374   :  { %535 = vsyncadd [#allocation4], 4294967040 }
 0x375   :  { %398 = vsyncpa [#allocation3], 1 }
 0x376   :  { %399 = vsyncpa [#allocation4], 1 }

</bundles_post_ra>
